<compile_context>
chip_gen: v7x
topology: tpu7x:2x2x1
jax: 0.10.0
libtpu: 0.0.40
codegen_flags: <defaults>
</compile_context>

<pallas_src>
import functools

import jax
import jax.numpy as jnp
from jax.experimental import pallas as pl
from jax.experimental.pallas import tpu as pltpu

INPUT_DIM = 11
HIDDEN_DIM = 128
LATENT_DIM = 64
MAX_ROW_TILE = 4096                    # rows per grid step; multiple of 256
VMEM_LIMIT_BYTES = 32 * 1024 * 1024    # explicit: v5e's default scoped limit is 16 MiB


def _round_up(a, b):
    return ((a + b - 1) // b) * b


def _mlp_kernel(x_ref, w1_ref, b1_ref, w2_ref, b2_ref, w3_ref, b3_ref, o_ref):
    """Fused 3-layer MLP on one row tile: relu(relu(x@W1+b1)@W2+b2)@W3+b3.

    Matmul operands may be f32 or bf16 (MXU dtype, works on v5e/v6e/v7x);
    accumulation is always f32 and the bias add / ReLU run in f32.
    """
    # Cast (if any) happens in VMEM — x is read from HBM in its native f32.
    x = x_ref[...].astype(w1_ref.dtype)

    h1 = jnp.dot(x, w1_ref[...], preferred_element_type=jnp.float32) + b1_ref[...]
    h1 = jnp.maximum(h1, 0.0).astype(w2_ref.dtype)

    h2 = jnp.dot(h1, w2_ref[...], preferred_element_type=jnp.float32) + b2_ref[...]
    h2 = jnp.maximum(h2, 0.0).astype(w3_ref.dtype)

    out = jnp.dot(h2, w3_ref[...], preferred_element_type=jnp.float32) + b3_ref[...]
    o_ref[...] = out.astype(o_ref.dtype)


@functools.partial(jax.jit, static_argnames=("use_bf16",))
def object_encoder_forward(x, params, use_bf16=False):
    """x: (B, N, input_dim) float32 -> (B, N, latent_dim) float32."""
    w1, b1, w2, b2, w3, b3 = params
    B, N, F = x.shape
    assert F == INPUT_DIM

    M = B * N

    # Row tile: as large as MAX_ROW_TILE (amortizes per-grid-step overhead),
    # but for mid-size M keep >= 2 grid steps so dimension_semantics=
    # ("parallel",) can shard across both TensorCores on v7x.
    if M <= 256:
        row_tile = _round_up(max(M, 8), 8)
    else:
        row_tile = min(MAX_ROW_TILE, _round_up(pl.cdiv(M, 2), 256))
    grid = (pl.cdiv(M, row_tile),)

    # Glue: flatten objects.  No padding / no extra HBM pass — partial
    # boundary blocks are handled by Pallas (OOB output rows are dropped).
    x_flat = x.reshape(M, F)

    # Optional bf16 MXU operands (valid on v5e/v6e/v7x). Biases stay f32;
    # x stays f32 in HBM and is cast inside the kernel.
    mxu_dtype = jnp.bfloat16 if use_bf16 else jnp.float32
    w1_c = w1.astype(mxu_dtype)
    w2_c = w2.astype(mxu_dtype)
    w3_c = w3.astype(mxu_dtype)

    w_itemsize = jnp.dtype(mxu_dtype).itemsize
    n_weight = F * HIDDEN_DIM + HIDDEN_DIM * HIDDEN_DIM + HIDDEN_DIM * LATENT_DIM
    flops = 2 * M * (F * HIDDEN_DIM
                     + HIDDEN_DIM * HIDDEN_DIM
                     + HIDDEN_DIM * LATENT_DIM)
    bytes_accessed = (M * F * 4                                   # x (f32 in HBM)
                      + n_weight * w_itemsize                     # weights
                      + (HIDDEN_DIM + HIDDEN_DIM + LATENT_DIM) * 4  # biases
                      + M * LATENT_DIM * 4)                       # out
    cost = pl.CostEstimate(flops=flops, transcendentals=0,
                           bytes_accessed=bytes_accessed)

    out = pl.pallas_call(
        _mlp_kernel,
        out_shape=jax.ShapeDtypeStruct((M, LATENT_DIM), jnp.float32),
        grid=grid,
        in_specs=[
            pl.BlockSpec((row_tile, F), lambda i: (i, 0)),              # x tile (unpadded)
            pl.BlockSpec((F, HIDDEN_DIM), lambda i: (0, 0)),            # W1
            pl.BlockSpec((1, HIDDEN_DIM), lambda i: (0, 0)),            # b1
            pl.BlockSpec((HIDDEN_DIM, HIDDEN_DIM), lambda i: (0, 0)),   # W2
            pl.BlockSpec((1, HIDDEN_DIM), lambda i: (0, 0)),            # b2
            pl.BlockSpec((HIDDEN_DIM, LATENT_DIM), lambda i: (0, 0)),   # W3
            pl.BlockSpec((1, LATENT_DIM), lambda i: (0, 0)),            # b3
        ],
        out_specs=pl.BlockSpec((row_tile, LATENT_DIM), lambda i: (i, 0)),
        compiler_params=pltpu.CompilerParams(
            dimension_semantics=("parallel",),
            vmem_limit_bytes=VMEM_LIMIT_BYTES),
        cost_estimate=cost,
    )(x_flat, w1_c, b1.reshape(1, -1), w2_c, b2.reshape(1, -1),
      w3_c, b3.reshape(1, -1))

    return out.reshape(B, N, LATENT_DIM)


def init_params(key):
    """Deterministic init mimicking PyTorch Linear default (U[-1/sqrt(fan_in), +])."""
    ks = jax.random.split(key, 6)

    def linear(kw, kb, fan_in, fan_out):
        bound = 1.0 / jnp.sqrt(fan_in)
        w = jax.random.uniform(kw, (fan_in, fan_out), jnp.float32, -bound, bound)
        b = jax.random.uniform(kb, (fan_out,), jnp.float32, -bound, bound)
        return w, b

    w1, b1 = linear(ks[0], ks[1], INPUT_DIM, HIDDEN_DIM)
    w2, b2 = linear(ks[2], ks[3], HIDDEN_DIM, HIDDEN_DIM)
    w3, b3 = linear(ks[4], ks[5], HIDDEN_DIM, LATENT_DIM)
    return (w1, b1, w2, b2, w3, b3)


def reference_forward(x, params):
    """Pure-JAX reference of the PyTorch forward, for a correctness check."""
    w1, b1, w2, b2, w3, b3 = params
    B, N, F = x.shape
    h = x.reshape(-1, F)
    h = jnp.maximum(h @ w1 + b1, 0.0)
    h = jnp.maximum(h @ w2 + b2, 0.0)
    h = h @ w3 + b3
    return h.reshape(B, N, LATENT_DIM)


if __name__ == "__main__":
    key = jax.random.PRNGKey(0)
    k_params, k_x = jax.random.split(key)

    params = init_params(k_params)

    # Small, module-consistent shapes: batch=2, num_objects=8, feature_dim=11.
    B, N = 2, 8
    x = jax.random.normal(k_x, (B, N, INPUT_DIM), dtype=jnp.float32)

    out = jax.block_until_ready(object_encoder_forward(x, params))
    ref = reference_forward(x, params)
    assert out.shape == (B, N, LATENT_DIM)
    assert jnp.allclose(out, ref, atol=1e-4, rtol=1e-4)

    # Multi-step grid with a partial boundary block (M = 2400 objects):
    # exercises the >=2-step grid + masked-store path.
    B2, N2 = 8, 300
    x2 = jax.random.normal(jax.random.PRNGKey(1), (B2, N2, INPUT_DIM),
                           dtype=jnp.float32)
    out2 = jax.block_until_ready(object_encoder_forward(x2, params))
    ref2 = reference_forward(x2, params)
    assert out2.shape == (B2, N2, LATENT_DIM)
    assert jnp.allclose(out2, ref2, atol=1e-4, rtol=1e-4)

    # bf16-MXU fast path (valid on v5e/v6e/v7x): f32 accumulation, bf16
    # operands => looser tolerance vs the f32 reference (expected rounding).
    out_bf16 = jax.block_until_ready(
        object_encoder_forward(x2, params, use_bf16=True))
    assert jnp.allclose(out_bf16, ref2, atol=5e-2, rtol=5e-2)

    print("KERNEL_OK")
</pallas_src>

<mosaic_0001>
module attributes {stable_mosaic.version = 11 : i64} {
  func.func @_mlp_kernel(%arg0: i32, %arg1: memref<16x11xf32, #tpu.memory_space<vmem>>, %arg2: memref<11x128xf32, #tpu.memory_space<vmem>>, %arg3: memref<1x128xf32, #tpu.memory_space<vmem>>, %arg4: memref<128x128xf32, #tpu.memory_space<vmem>>, %arg5: memref<1x128xf32, #tpu.memory_space<vmem>>, %arg6: memref<128x64xf32, #tpu.memory_space<vmem>>, %arg7: memref<1x64xf32, #tpu.memory_space<vmem>>, %arg8: memref<16x64xf32, #tpu.memory_space<vmem>>) attributes {dimension_semantics = [#tpu.dimension_semantics<parallel>], iteration_bounds = array<i64: 1>, scalar_prefetch = 0 : i64, scratch_operands = 0 : i64, tpu.core_type = #tpu.core_type<tc>, window_params = [{transform_indices = @transform_0, window_bounds = array<i64: 16, 11>}, {pipeline_mode = #tpu.pipeline_mode<synchronous>, transform_indices = @transform_1, window_bounds = array<i64: 11, 128>}, {pipeline_mode = #tpu.pipeline_mode<synchronous>, transform_indices = @transform_2, window_bounds = array<i64: 1, 128>}, {pipeline_mode = #tpu.pipeline_mode<synchronous>, transform_indices = @transform_3, window_bounds = array<i64: 128, 128>}, {pipeline_mode = #tpu.pipeline_mode<synchronous>, transform_indices = @transform_4, window_bounds = array<i64: 1, 128>}, {pipeline_mode = #tpu.pipeline_mode<synchronous>, transform_indices = @transform_5, window_bounds = array<i64: 128, 64>}, {pipeline_mode = #tpu.pipeline_mode<synchronous>, transform_indices = @transform_6, window_bounds = array<i64: 1, 64>}, {transform_indices = @transform_7, window_bounds = array<i64: 16, 64>}]} {
    %c0 = arith.constant 0 : index
    %c0_0 = arith.constant 0 : index
    %0 = vector.load %arg1[%c0, %c0_0] : memref<16x11xf32, #tpu.memory_space<vmem>>, vector<16x11xf32>
    %c0_1 = arith.constant 0 : index
    %c0_2 = arith.constant 0 : index
    %1 = vector.load %arg2[%c0_1, %c0_2] : memref<11x128xf32, #tpu.memory_space<vmem>>, vector<11x128xf32>
    %cst = arith.constant dense<0.000000e+00> : vector<16x128xf32>
    %2 = tpu.matmul %0, %1, %cst {dimension_numbers = #tpu.dot_dimension_numbers<[1], [0], [0], [1], [0, 0, 1, 1], [], []>} : vector<16x11xf32>, vector<11x128xf32>, vector<16x128xf32> -> vector<16x128xf32>
    %c0_3 = arith.constant 0 : index
    %c0_4 = arith.constant 0 : index
    %3 = vector.load %arg3[%c0_3, %c0_4] : memref<1x128xf32, #tpu.memory_space<vmem>>, vector<1x128xf32>
    %4 = vector.broadcast %3 : vector<1x128xf32> to vector<16x128xf32>
    %5 = arith.addf %2, %4 : vector<16x128xf32>
    %cst_5 = arith.constant 0.000000e+00 : f32
    %6 = vector.broadcast %cst_5 : f32 to vector<16x128xf32>
    %7 = arith.maximumf %5, %6 : vector<16x128xf32>
    %c0_6 = arith.constant 0 : index
    %c0_7 = arith.constant 0 : index
    %8 = vector.load %arg4[%c0_6, %c0_7] : memref<128x128xf32, #tpu.memory_space<vmem>>, vector<128x128xf32>
    %cst_8 = arith.constant dense<0.000000e+00> : vector<16x128xf32>
    %9 = tpu.matmul %7, %8, %cst_8 {dimension_numbers = #tpu.dot_dimension_numbers<[1], [0], [0], [1], [0, 0, 1, 1], [], []>} : vector<16x128xf32>, vector<128x128xf32>, vector<16x128xf32> -> vector<16x128xf32>
    %c0_9 = arith.constant 0 : index
    %c0_10 = arith.constant 0 : index
    %10 = vector.load %arg5[%c0_9, %c0_10] : memref<1x128xf32, #tpu.memory_space<vmem>>, vector<1x128xf32>
    %11 = vector.broadcast %10 : vector<1x128xf32> to vector<16x128xf32>
    %12 = arith.addf %9, %11 : vector<16x128xf32>
    %cst_11 = arith.constant 0.000000e+00 : f32
    %13 = vector.broadcast %cst_11 : f32 to vector<16x128xf32>
    %14 = arith.maximumf %12, %13 : vector<16x128xf32>
    %c0_12 = arith.constant 0 : index
    %c0_13 = arith.constant 0 : index
    %15 = vector.load %arg6[%c0_12, %c0_13] : memref<128x64xf32, #tpu.memory_space<vmem>>, vector<128x64xf32>
    %cst_14 = arith.constant dense<0.000000e+00> : vector<16x64xf32>
    %16 = tpu.matmul %14, %15, %cst_14 {dimension_numbers = #tpu.dot_dimension_numbers<[1], [0], [0], [1], [0, 0, 1, 1], [], []>} : vector<16x128xf32>, vector<128x64xf32>, vector<16x64xf32> -> vector<16x64xf32>
    %c0_15 = arith.constant 0 : index
    %c0_16 = arith.constant 0 : index
    %17 = vector.load %arg7[%c0_15, %c0_16] : memref<1x64xf32, #tpu.memory_space<vmem>>, vector<1x64xf32>
    %18 = vector.broadcast %17 : vector<1x64xf32> to vector<16x64xf32>
    %19 = arith.addf %16, %18 : vector<16x64xf32>
    %c0_17 = arith.constant 0 : index
    %c0_18 = arith.constant 0 : index
    %20 = vector.load %arg8[%c0_17, %c0_18] : memref<16x64xf32, #tpu.memory_space<vmem>>, vector<16x64xf32>
    tpu.vector_store %arg8[%c0_17, %c0_18], %19 {strides = array<i32>} : memref<16x64xf32, #tpu.memory_space<vmem>>, vector<16x64xf32>,
    return
  }
  func.func @transform_0(%arg0: i32) -> (i32, i32) {
    %c0_i32 = arith.constant 0 : i32
    %c0_i32_0 = arith.constant 0 : i32
    return %arg0, %c0_i32 : i32, i32
  }
  func.func @transform_1(%arg0: i32) -> (i32, i32) {
    %c0_i32 = arith.constant 0 : i32
    %c0_i32_0 = arith.constant 0 : i32
    %c0_i32_1 = arith.constant 0 : i32
    return %c0_i32, %c0_i32_0 : i32, i32
  }
  func.func @transform_2(%arg0: i32) -> (i32, i32) {
    %c0_i32 = arith.constant 0 : i32
    %c0_i32_0 = arith.constant 0 : i32
    %c0_i32_1 = arith.constant 0 : i32
    return %c0_i32, %c0_i32_0 : i32, i32
  }
  func.func @transform_3(%arg0: i32) -> (i32, i32) {
    %c0_i32 = arith.constant 0 : i32
    %c0_i32_0 = arith.constant 0 : i32
    %c0_i32_1 = arith.constant 0 : i32
    return %c0_i32, %c0_i32_0 : i32, i32
  }
  func.func @transform_4(%arg0: i32) -> (i32, i32) {
    %c0_i32 = arith.constant 0 : i32
    %c0_i32_0 = arith.constant 0 : i32
    %c0_i32_1 = arith.constant 0 : i32
    return %c0_i32, %c0_i32_0 : i32, i32
  }
  func.func @transform_5(%arg0: i32) -> (i32, i32) {
    %c0_i32 = arith.constant 0 : i32
    %c0_i32_0 = arith.constant 0 : i32
    %c0_i32_1 = arith.constant 0 : i32
    return %c0_i32, %c0_i32_0 : i32, i32
  }
  func.func @transform_6(%arg0: i32) -> (i32, i32) {
    %c0_i32 = arith.constant 0 : i32
    %c0_i32_0 = arith.constant 0 : i32
    %c0_i32_1 = arith.constant 0 : i32
    return %c0_i32, %c0_i32_0 : i32, i32
  }
  func.func @transform_7(%arg0: i32) -> (i32, i32) {
    %c0_i32 = arith.constant 0 : i32
    %c0_i32_0 = arith.constant 0 : i32
    return %arg0, %c0_i32 : i32, i32
  }
}

</mosaic_0001>

<bundles_post_ra>
// kernel: object_encoder_forward.1
= control target key start
LH: loop header
LB: loop body
LE: loop exit
PB: predicated region body
PF: predicated region fallthrough
CT: control target
= control target key end

     0   :  { %vm45_vm0 = vcmask 1042432   ;;  %vm564_vm1 = vmmov 1   ;;  %vm38_vm3 = vcmask 89088   ;;  %s739_s0 = inlined_call_operand.vmem [shape: f32[16,11], index: 0, kind: input, shape index: {}]   ;;  %s740_s1 = inlined_call_operand.vmem [shape: f32[11,128], index: 1, kind: input, shape index: {}]   ;;  %s741_s2 = inlined_call_operand.vmem [shape: f32[1,128], index: 2, kind: input, shape index: {}]   ;;  %s742_s3 = inlined_call_operand.vmem [shape: f32[128,128], index: 3, kind: input, shape index: {}]   ;;  %s743_s4 = inlined_call_operand.vmem [shape: f32[1,128], index: 4, kind: input, shape index: {}]   ;;  %s744_s5 = inlined_call_operand.vmem [shape: f32[128,64], index: 5, kind: input, shape index: {}]   ;;  %s745_s6 = inlined_call_operand.vmem [shape: f32[1,64], index: 6, kind: input, shape index: {}]   ;;  %s746_s7 = inlined_call_operand.hbm [shape: f32[16,64], index: 7, kind: output, shape index: {}]  }
   0x1   :  { %v29_v0 = vld [vmem:[%s740_s1] sm:$0xff]  ;;  %v30_v1 = vld [vmem:[%s740_s1 + $0x8] sm:$0x7]  ;;  %vm467_vm2 = vmpackc.low %vm45_vm0, %vm564_vm1 }
   0x2   :  { %v27_v2 = vld [vmem:[%s739_s0] sm:$0xff]  ;;  %v466_v3 = vpack.c.bf16 %v30_v1, %v29_v0  ;;  %v127_v5 = vld [vmem:[%s742_s3 + $0x8] sm:$0xff]  ;;  %v128_v6 = vld [vmem:[%s742_s3 + $0x10] sm:$0xff] }
   0x3   :  { %v126_v4 = vld [vmem:[%s742_s3] sm:$0xff]  ;;  %393 = vmatprep.mubr.msk.f32.mxu0 %vm38_vm3, %v27_v2  ;;  %v129_v7 = vld [vmem:[%s742_s3 + $0x18] sm:$0xff]  ;;  %v28_v10 = vld [vmem:[%s739_s0 + $0x8] sm:$0xff] }
   0x4   :  { %468 = vmatprep.subr.msk.bf16.mxu0 %vm467_vm2, %v466_v3  ;;  %v472_v8 = vpack.c.bf16 %v127_v5, %v126_v4  ;;  %v476_v9 = vpack.c.bf16 %v129_v7, %v128_v6  ;;  %v130_v11 = vld [vmem:[%s742_s3 + $0x20] sm:$0xff]  ;;  %v131_v12 = vld [vmem:[%s742_s3 + $0x28] sm:$0xff] }
   0x5   :  { %471 = vmatpush3.bf16.msk.msra.mxu0 %vm467_vm2, %v466_v3 }
   0x6   :  { %473 = vmatprep.subr.bf16.mxu1 %v472_v8 }
   0x7   :  { %475 = vmatpush3.bf16.msra.mxu1 %v472_v8 }
   0x8   :  { %12 = vsyncpa [#allocation3], 0  ;;  %394 = vmatmul.mubr.msk.f32.vlgmr.msra.gmra.mrb[0].mxu0 %vm38_vm3, %v28_v10  ;;  %477 = vmatprep.subr.bf16.mxu1 %v476_v9  ;;  %v480_v13 = vpack.c.bf16 %v131_v12, %v130_v11  ;;  %v132_v14 = vld [vmem:[%s742_s3 + $0x30] sm:$0xff]  ;;  %v133_v15 = vld [vmem:[%s742_s3 + $0x38] sm:$0xff]  ;;  %vm324_vm4 = vcmask 523264  }
   0x9   :  { %v484_v16 = vpack.c.bf16 %v133_v15, %v132_v14  ;;  %v134_v17 = vld [vmem:[%s742_s3 + $0x40] sm:$0xff]  ;;  %v135_v18 = vld [vmem:[%s742_s3 + $0x48] sm:$0xff]  ;;  %v136_v20 = vld [vmem:[%s742_s3 + $0x50] sm:$0xff] }
   0xa   :  { %v488_v19 = vpack.c.bf16 %v135_v18, %v134_v17  ;;  %v137_v21 = vld [vmem:[%s742_s3 + $0x58] sm:$0xff]  ;;  %v138_v23 = vld [vmem:[%s742_s3 + $0x60] sm:$0xff]  ;;  %v139_v24 = vld [vmem:[%s742_s3 + $0x68] sm:$0xff] }
   0xb   :  { %479 = vmatpush3.bf16.msra.mxu1 %v476_v9  ;;  %v492_v22 = vpack.c.bf16 %v137_v21, %v136_v20  ;;  %v496_v25 = vpack.c.bf16 %v139_v24, %v138_v23  ;;  %v140_v26 = vld [vmem:[%s742_s3 + $0x70] sm:$0xff]  ;;  %v141_v27 = vld [vmem:[%s742_s3 + $0x78] sm:$0xff]  ;;  %v226_v29 = vld [vmem:[%s744_s5] sm:$0xff] }
   0xc   :  { %481 = vmatprep.subr.bf16.mxu1 %v480_v13  ;;  %v500_v28 = vpack.c.bf16 %v141_v27, %v140_v26  ;;  %v227_v30 = vld [vmem:[%s744_s5 + $0x8] sm:$0xff]  ;;  %v228_v31 = vld [vmem:[%s744_s5 + $0x10] sm:$0xff]  ;;  %v229_v33 = vld [vmem:[%s744_s5 + $0x18] sm:$0xff] }
   0xd   :  { %v504_v32 = vpack.c.bf16 %v227_v30, %v226_v29  ;;  %v508_v34 = vpack.c.bf16 %v229_v33, %v228_v31  ;;  %v230_v35 = vld [vmem:[%s744_s5 + $0x20] sm:$0xff]  ;;  %v231_v36 = vld [vmem:[%s744_s5 + $0x28] sm:$0xff]  ;;  %v232_v38 = vld [vmem:[%s744_s5 + $0x30] sm:$0xff] }
   0xe   :  { %v512_v37 = vpack.c.bf16 %v231_v36, %v230_v35  ;;  %v233_v39 = vld [vmem:[%s744_s5 + $0x38] sm:$0xff]  ;;  %v234_v41 = vld [vmem:[%s744_s5 + $0x40] sm:$0xff]  ;;  %v235_v42 = vld [vmem:[%s744_s5 + $0x48] sm:$0xff] }
   0xf   :  { %483 = vmatpush3.bf16.msra.mxu1 %v480_v13  ;;  %505 = vmatprep.subr.bf16.mxu0 %v504_v32  ;;  %v516_v40 = vpack.c.bf16 %v233_v39, %v232_v38  ;;  %v520_v43 = vpack.c.bf16 %v235_v42, %v234_v41  ;;  %v236_v44 = vld [vmem:[%s744_s5 + $0x50] sm:$0xff]  ;;  %v237_v45 = vld [vmem:[%s744_s5 + $0x58] sm:$0xff]  ;;  %v238_v47 = vld [vmem:[%s744_s5 + $0x60] sm:$0xff] }
  0x10   :  { %485 = vmatprep.subr.bf16.mxu1 %v484_v16  ;;  %507 = vmatpush3.bf16.msra.mxu0 %v504_v32  ;;  %v524_v46 = vpack.c.bf16 %v237_v45, %v236_v44  ;;  %v239_v48 = vld [vmem:[%s744_s5 + $0x68] sm:$0xff]  ;;  %v343_v50 = vld [vmem:[%s741_s2] ss:$0 sm:$0xff]  ;;  %v240_v57 = vld [vmem:[%s744_s5 + $0x70] sm:$0xff] }
  0x11   :  { %509 = vmatprep.subr.bf16.mxu0 %v508_v34  ;;  %v528_v49 = vpack.c.bf16 %v239_v48, %v238_v47  ;;  %v241_v58 = vld [vmem:[%s744_s5 + $0x78] sm:$0xff]  ;;  %v347_v60 = vld [vmem:[%s743_s4] ss:$0 sm:$0xff]  ;;  %s565_s5 = smov [#allocation2]  }
  0x12   :  { %v532_v59 = vpack.c.bf16 %v241_v58, %v240_v57  ;;  %v348_v3 = vld [vmem:[%s745_s6] ss:$0 sm:$0xff]  ;;  %s332_s24 = sshll.u32 %s565_s5, 4  ;;  %s333_s24 = int_to_ptr.vmem [resolvable:$true] %s332_s24 }
  0x13   :  { %487 = vmatpush3.bf16.msra.mxu1 %v484_v16  ;;  %s540_s4 = scalar_lea.vmem %s333_s24, 256  ;;  %p545_p1 = scmp.lt.s32.totalorder %s333_s24, %s333_s24 }
  0x14   :  { %489 = vmatprep.subr.bf16.mxu1 %v488_v19  ;;  %511 = vmatpush3.bf16.msra.mxu0 %v508_v34  ;;  %p541_p0 = scmp.ne.s32.totalorder %s333_s24, %s540_s4  ;;  %p546_p2 = scmp.lt.s32.totalorder %s540_s4, %s540_s4 }
  0x15   :  { %513 = vmatprep.subr.bf16.mxu0 %v512_v37 }
  0x16   :  { %p547_p3 = por %p546_p2, %p545_p1 }
  0x17   :  { %491 = vmatpush3.bf16.msra.mxu1 %v488_v19 }
  0x18   :  { %493 = vmatprep.subr.bf16.mxu1 %v492_v22  ;;  %515 = vmatpush3.bf16.msra.mxu0 %v512_v37  ;;  %p548_p4 = pnand %p547_p3, %p541_p0 }
  0x19   :  { %517 = vmatprep.subr.bf16.mxu0 %v516_v40 }
  0x1b   :  { %495 = vmatpush3.bf16.msra.mxu1 %v492_v22 }
  0x1c   :  { %497 = vmatprep.subr.bf16.mxu1 %v496_v25  ;;  %519 = vmatpush3.bf16.msra.mxu0 %v516_v40 }
  0x1d   :  { %521 = vmatprep.subr.bf16.mxu0 %v520_v43 }
  0x1f   :  { %499 = vmatpush3.bf16.msra.mxu1 %v496_v25 }
  0x20   :  { %501 = vmatprep.subr.bf16.mxu1 %v500_v28  ;;  %523 = vmatpush3.bf16.msra.mxu0 %v520_v43 }
  0x21   :  { %525 = vmatprep.subr.bf16.mxu0 %v524_v46 }
  0x23   :  { %503 = vmatpush3.bf16.msra.mxu1 %v500_v28 }
  0x24   :  { %527 = vmatpush3.bf16.msra.mxu0 %v524_v46 }
  0x25   :  { %529 = vmatprep.subr.bf16.mxu0 %v528_v49 }
  0x28   :  { %531 = vmatpush3.bf16.msra.mxu0 %v528_v49 }
  0x29   :  { %533 = vmatprep.subr.bf16.mxu0 %v532_v59 }
  0x2c   :  { %535 = vmatpush3.bf16.msra.mxu0 %v532_v59 }
  0xdb   :  { %v395_v51 = vpop.f32.mrb[0].mxu0 }
  0xdc   :  { %v121_v52 = vadd.f32 %v395_v51, %v343_v50  ;;  %v115_v53 = vpop.f32.mrb[1].mxu0 }
  0xdd   :  { %v116_v54 = vadd.f32 %v343_v50, %v115_v53 }
  0xde   :  { %v125_v56 = vmax.f32 %v121_v52, 0.0 }
  0xdf   :  { %v124_v55 = vmax.f32 %v116_v54, 0.0 }
  0xe1   :  { %428 = vmatprep.mubr.f32.mxu1 %v124_v55 }
  0xe2   :  { %429 = vmatmul.mubr.f32.vlgmr.msra.gmra.mrb[0].mxu1 %v125_v56 }
 0x1b5   :  { %v430_v61 = vpop.f32.mrb[0].mxu1 }
 0x1b6   :  { %v221_v62 = vadd.f32 %v430_v61, %v347_v60  ;;  %v215_v63 = vpop.f32.mrb[1].mxu1 }
 0x1b7   :  { %v216_v0 = vadd.f32 %v347_v60, %v215_v63 }
 0x1b8   :  { %v225_v2 = vmax.f32 %v221_v62, 0.0 }
 0x1b9   :  { %v224_v1 = vmax.f32 %v216_v0, 0.0 }
 0x1bb   :  { %463 = vmatprep.mubr.f32.mxu0 %v224_v1 }
 0x1bc   :  { %464 = vmatmul.mubr.f32.vlgmr.msra.gmra.mrb[2].mxu0 %v225_v2 }
 0x28f   :  { %v465_v4 = vpop.f32.mrb[2].mxu0 }
 0x290   :  { %v321_v5 = vadd.f32 %v465_v4, %v348_v3  ;;  %v315_v6 = vpop.f32.mrb[3].mxu0 }
 0x291   :  { %v316_v7 = vadd.f32 %v348_v3, %v315_v6 }
 0x292   :  { %326 = vst.msk [vmem:[#allocation2 + $0x8] sm:$0xff] %vm324_vm4, %v321_v5 }
 0x293   :  { %325 = vst.msk [vmem:[#allocation2] sm:$0xff] %vm324_vm4, %v316_v7 }
 0x294   :  { %551 = shalt.err (!%p548_p4)
}
 0x295   :  { %s552_s6 = scalar_lea.hbm %s746_s7, 256 }
 0x296   :  { %p553_p5 = scmp.ne.s32.totalorder %s746_s7, %s552_s6  ;;  %p556_p6 = scmp.lt.u32.totalorder %s552_s6, %s746_s7 }
 0x298   :  { %p558_p7 = pnand %p556_p6, %p553_p5 }
 0x29a   :  { %561 = shalt.err (!%p558_p7)
}
 0x29b   :  { %s566_s8 = smov 128   ;;  %s567_s9 = smov 8  }
 0x29c   :  { %338 = dma.vmem_to_hbm [thread:$0]  %s333_s24, 256, %s746_s7, [#allocation3], %s566_s8, %s566_s8, %s567_s9  }
 0x29d   :  { %562 = dma.done.wait [#allocation3], 256  }
 0x29e   :  { %563 = vsyncadd [#allocation3], 4294967040 }
 0x29f   :  { %342 = vsyncpa [#allocation3], 1 }

</bundles_post_ra>
